<compile_context>
chip_gen: v7x
topology: tpu7x:2x2x1
jax: 0.10.0
libtpu: 0.0.40
codegen_flags: <defaults>
</compile_context>

<pallas_src>
import functools

import jax
import jax.numpy as jnp
from jax.experimental import pallas as pl
from jax.experimental.pallas import tpu as pltpu


def _round_up(n, m):
    return ((n + m - 1) // m) * m


def disch_kernel(x_ref, w1_ref, b1_ref, w2_ref, b2_ref, o_ref, *, hc):
    """One batch tile, batch-on-lanes layout.

    x_ref : (3, TB)      input features, batch on lanes (VMEM, streamed)
    w1_ref: (H_pad, 3)   layer-1 weight, PyTorch (out, in) layout (VMEM, resident)
    b1_ref: (H_pad, 1)   layer-1 bias (VMEM, resident)
    w2_ref: (H_pad, 1)   layer-2 weight, transposed (VMEM, resident)
    b2_ref: (1, 1)       layer-2 bias (SMEM scalar)
    o_ref : (1, TB)      output, batch on lanes (VMEM)
    hc    : static hidden-chunk size (multiple of 8); H_pad % hc == 0
    """
    # Read x rows straight off the ref — no (3, TB) load-then-slice temps.
    x0 = x_ref[0:1, :]                                    # (1, TB)
    x1 = x_ref[1:2, :]
    x2 = x_ref[2:3, :]

    def chunk(r0):
        """Contribution of hidden rows [r0, r0 + hc) to the (1, TB) output."""
        w1c = w1_ref[pl.ds(r0, hc), :]                    # (hc, 3)
        b1c = b1_ref[pl.ds(r0, hc), :]                    # (hc, 1)
        w2c = w2_ref[pl.ds(r0, hc), :]                    # (hc, 1)

        # Layer 1: K=3 contraction as three VPU broadcast-FMAs (no MXU).
        h = (w1c[:, 0:1] * x0
             + w1c[:, 1:2] * x1
             + w1c[:, 2:3] * x2
             + b1c)                                        # (hc, TB)

        # LogSigmoid, numerically stable: min(h, 0) - log1p(exp(-|h|)).
        h = jnp.minimum(h, 0.0) - jnp.log1p(jnp.exp(-jnp.abs(h)))

        # Layer 2 (N=1): multiply by w2, pairwise-add sublane groups on the
        # VPU down to 8 sublanes, finish with one cross-sublane XLU reduce.
        hw = w2c * h                                       # (hc, TB)
        s = hc
        while s > 8 and s % 16 == 0:
            half = s // 2
            hw = hw[:half, :] + hw[half:, :]
            s = half
        return jnp.sum(hw, axis=0, keepdims=True)          # (1, TB)

    num_chunks = w1_ref.shape[0] // hc
    b2 = b2_ref[0, 0]
    if num_chunks == 1:
        o_ref[...] = chunk(0) + b2
    else:
        # Accumulate per-chunk partials into the (VMEM-resident) output tile.
        o_ref[...] = jnp.full(o_ref.shape, b2, dtype=o_ref.dtype)

        @pl.loop(0, num_chunks)
        def _(c):
            o_ref[...] += chunk(pl.multiple_of(c * hc, hc))


def _disch_impl(xT, w1, b1, w2, b2, block_b):
    """xT: (3, B) float32, batch on the minor (lane) axis. Returns (B, 1)."""
    assert xT.shape[0] == 3
    B = xT.shape[1]
    H = w1.shape[0]

    # ---- hidden-dim chunking / padding (zero rows contribute 0) -----------
    Hc = _round_up(H, 8) if H <= 32 else 32
    H_pad = _round_up(H, Hc)

    w1c = jnp.asarray(w1, jnp.float32).reshape(H, 3)
    b1c = jnp.asarray(b1, jnp.float32).reshape(H, 1)
    w2c = jnp.asarray(w2, jnp.float32).reshape(1, H).T            # (H, 1)
    b2c = jnp.asarray(b2, jnp.float32).reshape(1, 1)
    if H_pad != H:
        w1c = jnp.pad(w1c, ((0, H_pad - H), (0, 0)))
        b1c = jnp.pad(b1c, ((0, H_pad - H), (0, 0)))
        w2c = jnp.pad(w2c, ((0, H_pad - H), (0, 0)))               # zeros -> no effect

    # ---- batch tiling -------------------------------------------------------
    # Pad B to a lane multiple, pick the tile count first (keeps padding waste
    # small), and force >=2 grid steps once B >= 256 so v7x's two TensorCores
    # both get work under the "parallel" grid axis.
    B128 = _round_up(max(B, 1), 128)
    min_tiles = 2 if B128 >= 256 else 1
    num_tiles = max(pl.cdiv(B128, block_b), min_tiles)
    TB = _round_up(pl.cdiv(B128, num_tiles), 128)
    B_pad = TB * num_tiles

    xTf = jnp.asarray(xT, jnp.float32)
    if B_pad != B:
        xTf = jnp.pad(xTf, ((0, 0), (0, B_pad - B)))

    # ---- VMEM budget: streamed double buffers + (Hc, TB) elementwise temps --
    est_bytes = 4 * (4 * 8 * TB               # x + out double buffers (8-sublane padded)
                     + 4 * Hc * TB            # h / logsigmoid / hw temporaries
                     + 8 * max(H_pad, 8) * 128)  # resident weights (lane padded)
    vmem_limit = int(min(100 * 1024 * 1024, max(32 * 1024 * 1024, 2 * est_bytes)))

    grid = (B_pad // TB,)

    out_t = pl.pallas_call(
        functools.partial(disch_kernel, hc=Hc),
        out_shape=jax.ShapeDtypeStruct((1, B_pad), jnp.float32),
        grid=grid,
        in_specs=[
            pl.BlockSpec((3, TB), lambda i: (0, i)),               # x tile, streamed
            pl.BlockSpec((H_pad, 3), lambda i: (0, 0)),            # w1, resident
            pl.BlockSpec((H_pad, 1), lambda i: (0, 0)),            # b1, resident
            pl.BlockSpec((H_pad, 1), lambda i: (0, 0)),            # w2ᵀ, resident
            pl.BlockSpec(memory_space=pltpu.MemorySpace.SMEM),     # b2 scalar
        ],
        out_specs=pl.BlockSpec((1, TB), lambda i: (0, i)),
        compiler_params=pltpu.CompilerParams(
            dimension_semantics=("parallel",),    # shards the batch grid on v7x's 2 TCs
            vmem_limit_bytes=vmem_limit,
        ),
        cost_estimate=pl.CostEstimate(
            flops=int(10 * B_pad * H_pad),
            transcendentals=int(2 * B_pad * H_pad),
            bytes_accessed=int(B_pad * 16 + (3 * H_pad + 2 * H_pad + 1) * 4),
        ),
    )(xTf, w1c, b1c, w2c, b2c)

    return out_t[:, :B].T                                          # (B, 1)


@functools.partial(jax.jit, static_argnames=("block_b",))
def disch_forward_t(xT, w1, b1, w2, b2, *, block_b=32768):
    """Forward pass with pre-transposed, lane-dense input xT of shape (3, B)."""
    return _disch_impl(xT, w1, b1, w2, b2, block_b)


@functools.partial(jax.jit, static_argnames=("block_b",))
def disch_forward(x, w1, b1, w2, b2, *, block_b=32768):
    """PyTorch-layout entry point: x is (B, 3), returns (B, 1).

    Does one wrapper-side transpose to the lane-dense (3, B) layout; callers
    that can produce (3, B) upstream should use disch_forward_t and skip it.
    """
    return _disch_impl(jnp.asarray(x, jnp.float32).T, w1, b1, w2, b2, block_b)


def init_params(key, hidden_dim):
    """PyTorch nn.Linear-style init (U(-k, k), k = 1/sqrt(fan_in)), PyTorch layouts."""
    k1, k2, k3, k4 = jax.random.split(key, 4)
    lim1 = 1.0 / jnp.sqrt(3.0)
    lim2 = 1.0 / jnp.sqrt(float(hidden_dim))
    w1 = jax.random.uniform(k1, (hidden_dim, 3), jnp.float32, -lim1, lim1)  # (out, in)
    b1 = jax.random.uniform(k2, (hidden_dim,), jnp.float32, -lim1, lim1)
    w2 = jax.random.uniform(k3, (1, hidden_dim), jnp.float32, -lim2, lim2)  # (out, in)
    b2 = jax.random.uniform(k4, (1,), jnp.float32, -lim2, lim2)
    return w1, b1, w2, b2


def reference_forward(x, w1, b1, w2, b2):
    h = jax.nn.log_sigmoid(
        jnp.dot(x, w1.T, precision=jax.lax.Precision.HIGHEST) + b1)
    return jnp.dot(h, w2.T, precision=jax.lax.Precision.HIGHEST) + b2


if __name__ == "__main__":
    key = jax.random.PRNGKey(0)
    kx_small, kx_big, kp = jax.random.split(key, 3)

    hidden_dim = 32
    w1, b1, w2, b2 = init_params(kp, hidden_dim)

    # Small batch: single 128-lane tile, single hidden chunk.
    x_small = jax.random.normal(kx_small, (8, 3), jnp.float32)
    out_small = jax.block_until_ready(disch_forward(x_small, w1, b1, w2, b2))
    ref_small = reference_forward(x_small, w1, b1, w2, b2)
    assert out_small.shape == (8, 1)
    assert jnp.allclose(out_small, ref_small, atol=1e-5, rtol=1e-5)

    # Larger batch: exercises the >=2-step parallel grid, padding, and
    # lane-dense pipelined stores.
    x_big = jax.random.normal(kx_big, (2500, 3), jnp.float32)
    out_big = jax.block_until_ready(disch_forward(x_big, w1, b1, w2, b2))
    ref_big = reference_forward(x_big, w1, b1, w2, b2)
    assert out_big.shape == (2500, 1)
    assert jnp.allclose(out_big, ref_big, atol=1e-5, rtol=1e-5)

    # Larger hidden_dim: exercises the in-kernel pl.loop over hidden chunks
    # (H=100 -> padded to 128, four 32-row chunks).
    w1L, b1L, w2L, b2L = init_params(kp, 100)
    x_mid = jax.random.normal(kx_big, (300, 3), jnp.float32)
    out_mid = jax.block_until_ready(disch_forward(x_mid, w1L, b1L, w2L, b2L))
    ref_mid = reference_forward(x_mid, w1L, b1L, w2L, b2L)
    assert out_mid.shape == (300, 1)
    assert jnp.allclose(out_mid, ref_mid, atol=1e-5, rtol=1e-5)

    print("KERNEL_OK")
</pallas_src>

<mosaic_0001>
module attributes {stable_mosaic.version = 11 : i64} {
  func.func @disch_kernel(%arg0: i32, %arg1: memref<3x128xf32, #tpu.memory_space<vmem>>, %arg2: memref<32x3xf32, #tpu.memory_space<vmem>>, %arg3: memref<32x1xf32, #tpu.memory_space<vmem>>, %arg4: memref<32x1xf32, #tpu.memory_space<vmem>>, %arg5: memref<1x1xf32, #tpu.memory_space<smem>>, %arg6: memref<1x128xf32, #tpu.memory_space<vmem>>) attributes {dimension_semantics = [#tpu.dimension_semantics<parallel>], iteration_bounds = array<i64: 1>, scalar_prefetch = 0 : i64, scratch_operands = 0 : i64, tpu.core_type = #tpu.core_type<tc>, window_params = [{transform_indices = @transform_0, window_bounds = array<i64: 3, 128>}, {pipeline_mode = #tpu.pipeline_mode<synchronous>, transform_indices = @transform_1, window_bounds = array<i64: 32, 3>}, {pipeline_mode = #tpu.pipeline_mode<synchronous>, transform_indices = @transform_2, window_bounds = array<i64: 32, 1>}, {pipeline_mode = #tpu.pipeline_mode<synchronous>, transform_indices = @transform_3, window_bounds = array<i64: 32, 1>}, {transform_indices = @transform_4, window_bounds = array<i64: 1, 1>}, {transform_indices = @transform_5, window_bounds = array<i64: 1, 128>}]} {
    %c0 = arith.constant 0 : index
    %c0_0 = arith.constant 0 : index
    %0 = vector.load %arg1[%c0, %c0_0] : memref<3x128xf32, #tpu.memory_space<vmem>>, vector<1x128xf32>
    %c1 = arith.constant 1 : index
    %c0_1 = arith.constant 0 : index
    %1 = vector.load %arg1[%c1, %c0_1] : memref<3x128xf32, #tpu.memory_space<vmem>>, vector<1x128xf32>
    %c2 = arith.constant 2 : index
    %c0_2 = arith.constant 0 : index
    %2 = vector.load %arg1[%c2, %c0_2] : memref<3x128xf32, #tpu.memory_space<vmem>>, vector<1x128xf32>
    %c0_3 = arith.constant 0 : index
    %c0_4 = arith.constant 0 : index
    %3 = memref.load %arg5[%c0_3, %c0_4] : memref<1x1xf32, #tpu.memory_space<smem>>
    %c0_5 = arith.constant 0 : index
    %c0_6 = arith.constant 0 : index
    %4 = vector.load %arg2[%c0_5, %c0_6] : memref<32x3xf32, #tpu.memory_space<vmem>>, vector<32x3xf32>
    %c0_7 = arith.constant 0 : index
    %c0_8 = arith.constant 0 : index
    %5 = vector.load %arg3[%c0_7, %c0_8] : memref<32x1xf32, #tpu.memory_space<vmem>>, vector<32x1xf32>
    %c0_9 = arith.constant 0 : index
    %c0_10 = arith.constant 0 : index
    %6 = vector.load %arg4[%c0_9, %c0_10] : memref<32x1xf32, #tpu.memory_space<vmem>>, vector<32x1xf32>
    %7 = vector.extract_strided_slice %4 {offsets = [0, 0], sizes = [32, 1], strides = [1, 1]} : vector<32x3xf32> to vector<32x1xf32>
    %8 = vector.broadcast %7 : vector<32x1xf32> to vector<32x128xf32>
    %9 = vector.broadcast %0 : vector<1x128xf32> to vector<32x128xf32>
    %10 = arith.mulf %8, %9 : vector<32x128xf32>
    %11 = vector.extract_strided_slice %4 {offsets = [0, 1], sizes = [32, 1], strides = [1, 1]} : vector<32x3xf32> to vector<32x1xf32>
    %12 = vector.broadcast %11 : vector<32x1xf32> to vector<32x128xf32>
    %13 = vector.broadcast %1 : vector<1x128xf32> to vector<32x128xf32>
    %14 = arith.mulf %12, %13 : vector<32x128xf32>
    %15 = arith.addf %10, %14 : vector<32x128xf32>
    %16 = vector.extract_strided_slice %4 {offsets = [0, 2], sizes = [32, 1], strides = [1, 1]} : vector<32x3xf32> to vector<32x1xf32>
    %17 = vector.broadcast %16 : vector<32x1xf32> to vector<32x128xf32>
    %18 = vector.broadcast %2 : vector<1x128xf32> to vector<32x128xf32>
    %19 = arith.mulf %17, %18 : vector<32x128xf32>
    %20 = arith.addf %15, %19 : vector<32x128xf32>
    %21 = vector.broadcast %5 : vector<32x1xf32> to vector<32x128xf32>
    %22 = arith.addf %20, %21 : vector<32x128xf32>
    %cst = arith.constant 0.000000e+00 : f32
    %23 = vector.broadcast %cst : f32 to vector<32x128xf32>
    %24 = arith.minimumf %22, %23 : vector<32x128xf32>
    %25 = math.absf %22 : vector<32x128xf32>
    %cst_11 = arith.constant 0.000000e+00 : f32
    %26 = vector.broadcast %cst_11 : f32 to vector<32x128xf32>
    %27 = arith.subf %26, %25 : vector<32x128xf32>
    %28 = math.exp %27 : vector<32x128xf32>
    %29 = math.log1p %28 : vector<32x128xf32>
    %30 = arith.subf %24, %29 : vector<32x128xf32>
    %31 = vector.broadcast %6 : vector<32x1xf32> to vector<32x128xf32>
    %32 = arith.mulf %31, %30 : vector<32x128xf32>
    %33 = vector.extract_strided_slice %32 {offsets = [0, 0], sizes = [16, 128], strides = [1, 1]} : vector<32x128xf32> to vector<16x128xf32>
    %34 = vector.extract_strided_slice %32 {offsets = [16, 0], sizes = [16, 128], strides = [1, 1]} : vector<32x128xf32> to vector<16x128xf32>
    %35 = arith.addf %33, %34 : vector<16x128xf32>
    %36 = vector.extract_strided_slice %35 {offsets = [0, 0], sizes = [8, 128], strides = [1, 1]} : vector<16x128xf32> to vector<8x128xf32>
    %37 = vector.extract_strided_slice %35 {offsets = [8, 0], sizes = [8, 128], strides = [1, 1]} : vector<16x128xf32> to vector<8x128xf32>
    %38 = arith.addf %36, %37 : vector<8x128xf32>
    %cst_12 = arith.constant dense<0.000000e+00> : vector<128xf32>
    %39 = vector.multi_reduction <add>, %38, %cst_12 [0] : vector<8x128xf32> to vector<128xf32>
    %40 = vector.shape_cast %39 : vector<128xf32> to vector<1x128xf32>
    %41 = vector.broadcast %3 : f32 to vector<1x128xf32>
    %42 = arith.addf %40, %41 : vector<1x128xf32>
    %c0_13 = arith.constant 0 : index
    %c0_14 = arith.constant 0 : index
    %43 = vector.load %arg6[%c0_13, %c0_14] : memref<1x128xf32, #tpu.memory_space<vmem>>, vector<1x128xf32>
    tpu.vector_store %arg6[%c0_13, %c0_14], %42 {strides = array<i32>} : memref<1x128xf32, #tpu.memory_space<vmem>>, vector<1x128xf32>,
    return
  }
  func.func @transform_0(%arg0: i32) -> (i32, i32) {
    %c0_i32 = arith.constant 0 : i32
    %c0_i32_0 = arith.constant 0 : i32
    return %c0_i32, %arg0 : i32, i32
  }
  func.func @transform_1(%arg0: i32) -> (i32, i32) {
    %c0_i32 = arith.constant 0 : i32
    %c0_i32_0 = arith.constant 0 : i32
    %c0_i32_1 = arith.constant 0 : i32
    return %c0_i32, %c0_i32_0 : i32, i32
  }
  func.func @transform_2(%arg0: i32) -> (i32, i32) {
    %c0_i32 = arith.constant 0 : i32
    %c0_i32_0 = arith.constant 0 : i32
    %c0_i32_1 = arith.constant 0 : i32
    return %c0_i32, %c0_i32_0 : i32, i32
  }
  func.func @transform_3(%arg0: i32) -> (i32, i32) {
    %c0_i32 = arith.constant 0 : i32
    %c0_i32_0 = arith.constant 0 : i32
    %c0_i32_1 = arith.constant 0 : i32
    return %c0_i32, %c0_i32_0 : i32, i32
  }
  func.func @transform_4(%arg0: i32) -> (i32, i32) {
    %c0_i32 = arith.constant 0 : i32
    %c0_i32_0 = arith.constant 0 : i32
    %c0_i32_1 = arith.constant 0 : i32
    return %c0_i32, %c0_i32_0 : i32, i32
  }
  func.func @transform_5(%arg0: i32) -> (i32, i32) {
    %c0_i32 = arith.constant 0 : i32
    %c0_i32_0 = arith.constant 0 : i32
    return %c0_i32, %arg0 : i32, i32
  }
}

</mosaic_0001>

<bundles_post_ra>
// kernel: disch_forward.1
= control target key start
LH: loop header
LB: loop body
LE: loop exit
PB: predicated region body
PF: predicated region fallthrough
CT: control target
= control target key end

     0   :  { %v274_v0 = vmov 1   ;;  %v275_v1 = vmov 0   ;;  %v276_v6 = vmov 2   ;;  %s370_s1 = inlined_call_operand.vmem [shape: f32[32,3], index: 1, kind: input, shape index: {}]   ;;  %s371_s2 = inlined_call_operand.vmem [shape: f32[32,1], index: 2, kind: input, shape index: {}]   ;;  %s372_s3 = inlined_call_operand.vmem [shape: f32[32,1], index: 3, kind: input, shape index: {}]   ;;  %s373_s0 = inlined_call_operand.vmem [shape: f32[3,128], index: 0, kind: input, shape index: {}]   ;;  %s374_s4 = inlined_call_operand.<no memory space> [shape: f32[1,1], index: 4, kind: input, shape index: {}]   ;;  %s375_s5 = inlined_call_operand.vmem [shape: f32[1,128], index: 5, kind: output, shape index: {}]  }
   0x1   :  { %252 = vset.pattern.permute.xlu0 %v274_v0  ;;  %251 = vset.pattern.permute.xlu1 %v275_v1  ;;  %v27_v2 = vld [vmem:[%s370_s1 + $0x10] sm:$0xff]  ;;  %v25_v3 = vld [vmem:[%s370_s1] sm:$0xff]  ;;  %v28_v4 = vld [vmem:[%s370_s1 + $0x18] sm:$0xff] }
   0x2   :  { %49 = vperm.xlu1 %251, %v27_v2   ;;  %66 = vperm.xlu0 %252, %v25_v3   ;;  %v26_v5 = vld [vmem:[%s370_s1 + $0x8] sm:$0xff]  ;;  %v29_v7 = vld [vmem:[%s371_s2] sm:$0xff]  ;;  %v32_v8 = vld [vmem:[%s371_s2 + $0x18] sm:$0xff] }
   0x3   :  { %v34_v9 = vld [vmem:[%s372_s3 + $0x8] sm:$0xff]  ;;  %v36_v11 = vld [vmem:[%s372_s3 + $0x18] sm:$0xff]  ;;  %v31_v12 = vld [vmem:[%s371_s2 + $0x10] sm:$0xff] }
   0x4   :  { %v30_v10 = vld [vmem:[%s371_s2 + $0x8] sm:$0xff]  ;;  %v33_v13 = vld [vmem:[%s372_s3] sm:$0xff]  ;;  %v35_v14 = vld [vmem:[%s372_s3 + $0x10] sm:$0xff] }
   0x5   :  { %v245_v22 = vld [vmem:[%s373_s0] ss:$0 sm:$0xff]  ;;  %v246_v25 = vld [vmem:[%s373_s0 + $0x1] ss:$0 sm:$0xff]  ;;  %v247_v26 = vld [vmem:[%s373_s0 + $0x2] ss:$0 sm:$0xff] }
   0x6   :  { %54 = vperm.xlu1 %251, %v28_v4   ;;  %78 = vperm.xlu0 %252, %v28_v4  }
   0xa   :  { %253 = vset.pattern.permute.xlu1 %v274_v0  ;;  %255 = vset.pattern.permute.xlu0 %v276_v6 }
   0xb   :  { %70 = vperm.xlu1 %253, %v26_v5   ;;  %98 = vperm.xlu0 %255, %v26_v5  }
   0xf   :  { %74 = vperm.xlu1 %253, %v27_v2   ;;  %256 = vset.pattern.permute.xlu0 %v275_v1 }
  0x10   :  { %39 = vperm.xlu0 %256, %v25_v3  }
  0x13   :  { %254 = vset.pattern.permute.xlu1 %v276_v6 }
  0x14   :  { %94 = vperm.xlu1 %254, %v25_v3   ;;  %44 = vperm.xlu0 %256, %v26_v5  }
  0x18   :  { %102 = vperm.xlu1 %254, %v27_v2   ;;  %123 = vperm.xlu0 %256, %v29_v7  }
  0x1c   :  { %106 = vperm.xlu1 %254, %v28_v4   ;;  %138 = vperm.xlu0 %256, %v32_v8  }
  0x20   :  { %257 = vset.pattern.permute.xlu1 %v275_v1  ;;  %212 = vperm.xlu0 %256, %v34_v9  }
  0x21   :  { %128 = vperm.xlu1 %257, %v30_v10  }
  0x24   :  { %222 = vperm.xlu0 %256, %v36_v11  }
  0x25   :  { %133 = vperm.xlu1 %257, %v31_v12  }
  0x29   :  { %207 = vperm.xlu1 %257, %v33_v13  }
  0x2d   :  { %217 = vperm.xlu1 %257, %v35_v14  }
  0x81   :  { %v50_v15 = vpop.permute.xlu1 %49  ;;  %v67_v16 = vpop.permute.xlu0 %66 }
  0x82   :  { %v85_v27 = vmul.f32 %v246_v25, %v67_v16  ;;  %v63_v50 = vmul.f32 %v245_v22, %v50_v15 }
  0x85   :  { %v55_v17 = vpop.permute.xlu1 %54  ;;  %v79_v18 = vpop.permute.xlu0 %78 }
  0x86   :  { %v64_v36 = vmul.f32 %v245_v22, %v55_v17  ;;  %v88_v37 = vmul.f32 %v246_v25, %v79_v18 }
  0x88   :  { %v92_v43 = vadd.f32 %v88_v37, %v64_v36 }
  0x8a   :  { %v71_v19 = vpop.permute.xlu1 %70  ;;  %v99_v20 = vpop.permute.xlu0 %98 }
  0x8b   :  { %v86_v39 = vmul.f32 %v246_v25, %v71_v19  ;;  %v114_v46 = vmul.f32 %v247_v26, %v99_v20 }
  0x8e   :  { %v75_v21 = vpop.permute.xlu1 %74 }
  0x8f   :  { %v40_v23 = vpop.permute.xlu0 %39  ;;  %v87_v47 = vmul.f32 %v246_v25, %v75_v21 }
  0x90   :  { %v61_v24 = vmul.f32 %v245_v22, %v40_v23 }
  0x91   :  { %v91_v56 = vadd.f32 %v87_v47, %v63_v50 }
  0x92   :  { %v89_v30 = vadd.f32 %v85_v27, %v61_v24 }
  0x93   :  { %v95_v28 = vpop.permute.xlu1 %94  ;;  %v45_v29 = vpop.permute.xlu0 %44 }
  0x94   :  { %v113_v31 = vmul.f32 %v247_v26, %v95_v28  ;;  %v62_v33 = vmul.f32 %v245_v22, %v45_v29 }
  0x96   :  { %v117_v32 = vadd.f32 %v113_v31, %v89_v30  ;;  %v90_v41 = vadd.f32 %v86_v39, %v62_v33 }
  0x97   :  { %v103_v34 = vpop.permute.xlu1 %102  ;;  %v124_v35 = vpop.permute.xlu0 %123 }
  0x98   :  { %v352_v38 = vadd.f32 %v124_v35, %v117_v32  ;;  %v115_v51 = vmul.f32 %v247_v26, %v103_v34  ;;  %v118_v53 = vadd.f32 %v114_v46, %v90_v41 }
  0x9a   :  { %v149_v40 = vand.u32 2147483647, %v352_v38  ;;  %v119_v60 = vadd.f32 %v115_v51, %v91_v56 }
  0x9b   :  { %v107_v42 = vpop.permute.xlu1 %106  ;;  %v139_v52 = vpop.permute.xlu0 %138 }
  0x9c   :  { %v153_v44 = vsub.f32 0.0, %v149_v40  ;;  %v116_v45 = vmul.f32 %v247_v26, %v107_v42 }
  0x9e   :  { %v157_v48 = vmul.f32 1.442695, %v153_v44  ;;  %v120_v49 = vadd.f32 %v116_v45, %v92_v43  ;;  %v145_v44 = vmin.f32 %v352_v38, 0.0 }
  0x9f   :  { %v213_v33 = vpop.permute.xlu0 %212 }
  0xa0   :  { %v355_v54 = vadd.f32 %v139_v52, %v120_v49  ;;  %v129_v55 = vpop.permute.xlu1 %128  ;;  %258 = vpow2.f32 %v157_v48 }
  0xa1   :  { %v142_v57 = vadd.f32 %v129_v55, %v118_v53 }
  0xa2   :  { %v152_v58 = vand.u32 2147483647, %v355_v54  ;;  %v148_v26 = vmin.f32 %v355_v54, 0.0 }
  0xa3   :  { %v150_v59 = vand.u32 2147483647, %v142_v57  ;;  %v146_v29 = vmin.f32 %v142_v57, 0.0  ;;  %v223_v51 = vpop.permute.xlu0 %222 }
  0xa4   :  { %v156_v61 = vsub.f32 0.0, %v152_v58  ;;  %v134_v62 = vpop.permute.xlu1 %133 }
  0xa5   :  { %v154_v63 = vsub.f32 0.0, %v150_v59  ;;  %v358_v0 = vadd.f32 %v134_v62, %v119_v60 }
  0xa6   :  { %v163_v1 = vmul.f32 1.442695, %v156_v61 }
  0xa7   :  { %v159_v2 = vmul.f32 1.442695, %v154_v63  ;;  %v151_v3 = vand.u32 2147483647, %v358_v0  ;;  %v147_v49 = vmin.f32 %v358_v0, 0.0  ;;  %v238_v0 = vstv %s374_s4 }
  0xa8   :  { %260 = vpow2.f32 %v163_v1  ;;  %v208_v41 = vpop.permute.xlu1 %207 }
  0xa9   :  { %262 = vpow2.f32 %v159_v2  ;;  %v155_v4 = vsub.f32 0.0, %v151_v3 }
  0xaa   :  { %v259_v5 = vpop.eup %258 }
  0xab   :  { %v161_v6 = vmul.f32 1.442695, %v155_v4  ;;  %v165_v7 = vadd.f32 1.0, %v259_v5  ;;  %v168_v14 = vmul.f32 -0.5, %v259_v5  ;;  %v171_v24 = vand.u32 2147483647, %v259_v5 }
  0xac   :  { %v218_v56 = vpop.permute.xlu1 %217 }
  0xad   :  { %264 = vpow2.f32 %v161_v6  ;;  %v169_v19 = vadd.f32 1.0, %v168_v14  ;;  %vm172_vm2 = vcmp.lt.f32.partialorder %v171_v24, 0.0004427343 }
  0xae   :  { %266 = vlog2.f32 %v165_v7 }
  0xaf   :  { %v170_v32 = vmul.f32 %v259_v5, %v169_v19 }
  0xb2   :  { %v261_v8 = vpop.eup %260 }
  0xb3   :  { %v263_v9 = vpop.eup %262  ;;  %v192_v10 = vadd.f32 1.0, %v261_v8  ;;  %v195_v13 = vmul.f32 -0.5, %v261_v8  ;;  %v198_v21 = vand.u32 2147483647, %v261_v8 }
  0xb4   :  { %v174_v11 = vadd.f32 1.0, %v263_v9  ;;  %v177_v16 = vmul.f32 -0.5, %v263_v9  ;;  %v180_v23 = vand.u32 2147483647, %v263_v9 }
  0xb5   :  { %268 = vlog2.f32 %v192_v10  ;;  %v196_v18 = vadd.f32 1.0, %v195_v13  ;;  %vm199_vm0 = vcmp.lt.f32.partialorder %v198_v21, 0.0004427343 }
  0xb6   :  { %270 = vlog2.f32 %v174_v11  ;;  %v178_v20 = vadd.f32 1.0, %v177_v16  ;;  %vm181_vm1 = vcmp.lt.f32.partialorder %v180_v23, 0.0004427343 }
  0xb7   :  { %v265_v12 = vpop.eup %264  ;;  %v197_v31 = vmul.f32 %v261_v8, %v196_v18 }
  0xb8   :  { %v183_v15 = vadd.f32 1.0, %v265_v12  ;;  %v267_v17 = vpop.eup %266  ;;  %v186_v22 = vmul.f32 -0.5, %v265_v12  ;;  %v179_v35 = vmul.f32 %v263_v9, %v178_v20  ;;  %v189_v39 = vand.u32 2147483647, %v265_v12 }
  0xb9   :  { %v167_v27 = vmul.f32 0.6931472, %v267_v17 }
  0xba   :  { %272 = vlog2.f32 %v183_v15  ;;  %v187_v36 = vadd.f32 1.0, %v186_v22  ;;  %vm190_vm3 = vcmp.lt.f32.partialorder %v189_v39, 0.0004427343 }
  0xbb   :  { %v173_v42 = vsel %vm172_vm2, %v170_v32, %v167_v27 }
  0xbc   :  { %v188_v48 = vmul.f32 %v265_v12, %v187_v36  ;;  %v201_v50 = vsub.f32 %v145_v44, %v173_v42 }
  0xbe   :  { %v225_v57 = vmul.f32 %v208_v41, %v201_v50 }
  0xbf   :  { %v269_v25 = vpop.eup %268 }
  0xc0   :  { %v271_v28 = vpop.eup %270  ;;  %v194_v30 = vmul.f32 0.6931472, %v269_v25 }
  0xc1   :  { %v176_v34 = vmul.f32 0.6931472, %v271_v28 }
  0xc2   :  { %v200_v37 = vsel %vm199_vm0, %v197_v31, %v194_v30 }
  0xc3   :  { %v182_v40 = vsel %vm181_vm1, %v179_v35, %v176_v34  ;;  %v204_v46 = vsub.f32 %v148_v26, %v200_v37 }
  0xc4   :  { %v273_v43 = vpop.eup %272  ;;  %v202_v45 = vsub.f32 %v146_v29, %v182_v40 }
  0xc5   :  { %v185_v47 = vmul.f32 0.6931472, %v273_v43  ;;  %v228_v54 = vmul.f32 %v223_v51, %v204_v46 }
  0xc6   :  { %v226_v53 = vmul.f32 %v213_v33, %v202_v45 }
  0xc7   :  { %v191_v52 = vsel %vm190_vm3, %v188_v48, %v185_v47 }
  0xc8   :  { %v203_v55 = vsub.f32 %v147_v49, %v191_v52  ;;  %v230_v59 = vadd.f32 %v228_v54, %v226_v53 }
  0xca   :  { %v227_v58 = vmul.f32 %v218_v56, %v203_v55 }
  0xcc   :  { %v229_v60 = vadd.f32 %v227_v58, %v225_v57 }
  0xce   :  { %v231_v61 = vadd.f32 %v230_v59, %v229_v60 }
  0xd0   :  { %v232_v38 = vrot.slane %v231_v61, 4 }
  0xd2   :  { %v233_v62 = vadd.f32 %v232_v38, %v231_v61 }
  0xd4   :  { %v234_v63 = vrot.slane %v233_v62, 2 }
  0xd6   :  { %v235_v1 = vadd.f32 %v234_v63, %v233_v62 }
  0xd8   :  { %v236_v2 = vrot.slane %v235_v1, 1 }
  0xda   :  { %v237_v3 = vadd.f32 %v236_v2, %v235_v1 }
  0xdc   :  { %v239_v4 = vadd.f32 %v238_v0, %v237_v3 }
  0xde   :  { %240 = vst [vmem:[%s375_s5] sm:$0x1] %v239_v4 }

</bundles_post_ra>
